<compile_context>
chip_gen: v5e
topology: v5e:2x2
jax: 0.10.0
libtpu: 0.0.40
codegen_flags: <defaults>
</compile_context>

<pallas_src>
import jax
import jax.numpy as jnp
from jax import lax
from jax.experimental import pallas as pl
from jax.experimental.pallas import tpu as pltpu


def _round_up(x, m):
    return ((x + m - 1) // m) * m


# ---------------------------------------------------------------------------
# Lane-dense ("packed") kernel: output block is (TILE_R, 128), requires F | 128.
# ---------------------------------------------------------------------------
def _time_embedding_packed_kernel(t_ref, w_ref, b_ref, gid_ref, per_ref, o_ref):
    # t_ref   : (TILE_R, G) f32   -- G original time rows packed per output row
    # w_ref   : (1, 128)    f32   -- fused (w_lin | w_per) tiled G times over lanes
    # b_ref   : (1, 128)    f32   -- fused (b_lin | b_per) tiled G times over lanes
    # gid_ref : (1, 128)    i32   -- lane // F  (which packed t column feeds this lane)
    # per_ref : (1, 128)    i32   -- 1 where lane is a periodic (sin) column, else 0
    # o_ref   : (TILE_R, 128)
    t = t_ref[...]
    g_count = t.shape[1]
    gid = gid_ref[...]

    # Broadcast each packed t column across its F-lane group via a short select
    # chain (no relayout of the streamed data; constants stay resident).
    tb = t[:, 0:1]
    for g in range(1, g_count):
        tb = jnp.where(gid == g, t[:, g:g + 1], tb)

    z = tb * w_ref[...] + b_ref[...]
    o_ref[...] = jnp.where(per_ref[...] == 0, z, jnp.sin(z)).astype(o_ref.dtype)


# ---------------------------------------------------------------------------
# Fallback kernel for F that does not divide 128: plain (TILE_N, F) blocks.
# ---------------------------------------------------------------------------
def _time_embedding_rowwise_kernel(t_ref, w_ref, b_ref, o_ref):
    # t_ref: (TILE_N, 1), w_ref/b_ref: (1, F), o_ref: (TILE_N, F)
    z = t_ref[...] * w_ref[...] + b_ref[...]
    col = lax.broadcasted_iota(jnp.int32, z.shape, 1)
    o_ref[...] = jnp.where(col < 1, z, jnp.sin(z)).astype(o_ref.dtype)


def time_embedding(t, w_lin, b_lin, w_per, b_per, *, tile_n=2048,
                   out_dtype=jnp.float32):
    """Forward pass of TimeEmbedding (eval mode).

    t: (B, L) time stamps.
    w_lin: (1, 1), b_lin: (1,)        -- nn.Linear(1, 1)
    w_per: (F-1, 1), b_per: (F-1,)    -- nn.Linear(1, F-1)
    Returns (B, L, F) in `out_dtype`.
    `tile_n` = original rows per grid step (sweepable; kept a multiple of the
    row alignment and clamped for small inputs so block sizes stay modest for
    all of v5e/v6e/v7x VMEM budgets while the grid still shards across cores).
    """
    B, L = t.shape
    Fm1 = w_per.shape[0]
    F = Fm1 + 1
    N = B * L

    # Fuse the two Linear(1, .) layers into one (1, F) weight / bias row.
    w_full = jnp.concatenate(
        [w_lin.reshape(1, 1), w_per.reshape(Fm1, 1).T], axis=1).astype(jnp.float32)
    b_full = jnp.concatenate(
        [b_lin.reshape(1), b_per.reshape(Fm1)]).reshape(1, F).astype(jnp.float32)

    t_flat = t.reshape(-1).astype(jnp.float32)
    compiler_params = pltpu.CompilerParams(dimension_semantics=("parallel",))

    if F <= 128 and 128 % F == 0:
        # ---- lane-dense packed path --------------------------------------
        G = 128 // F
        row_align = 8 * G                       # 8 packed sublanes * G rows each
        tile_rows = min(tile_n, _round_up(N, row_align))
        tile_rows = max(row_align, _round_up(tile_rows, row_align))
        N_pad = _round_up(N, tile_rows)
        if N_pad != N:
            t_flat = jnp.pad(t_flat, (0, N_pad - N))
        t_packed = t_flat.reshape(N_pad // G, G)

        lane = jnp.arange(128, dtype=jnp.int32)
        gid = (lane // F).reshape(1, 128)                           # packed column per lane
        per = ((lane % F) != 0).astype(jnp.int32).reshape(1, 128)   # periodic (sin) lanes
        w_packed = jnp.tile(w_full, (1, G))                         # (1, 128)
        b_packed = jnp.tile(b_full, (1, G))                         # (1, 128)

        tile_r = tile_rows // G                                     # packed rows / step
        rows_packed = N_pad // G

        out_packed = pl.pallas_call(
            _time_embedding_packed_kernel,
            out_shape=jax.ShapeDtypeStruct((rows_packed, 128), out_dtype),
            grid_spec=pltpu.PrefetchScalarGridSpec(
                num_scalar_prefetch=0,
                grid=(rows_packed // tile_r,),
                in_specs=[
                    pl.BlockSpec((tile_r, G), lambda i: (i, 0)),
                    pl.BlockSpec((1, 128), lambda i: (0, 0)),
                    pl.BlockSpec((1, 128), lambda i: (0, 0)),
                    pl.BlockSpec((1, 128), lambda i: (0, 0)),
                    pl.BlockSpec((1, 128), lambda i: (0, 0)),
                ],
                out_specs=pl.BlockSpec((tile_r, 128), lambda i: (i, 0)),
            ),
            compiler_params=compiler_params,
        )(t_packed, w_packed, b_packed, gid, per)

        out_flat = out_packed.reshape(N_pad, F)[:N]   # metadata-only reshape/slice
    else:
        # ---- fallback: plain (rows, F) blocks, still large-tiled ----------
        row_align = 8
        tile_rows = min(tile_n, _round_up(N, row_align))
        tile_rows = max(row_align, _round_up(tile_rows, row_align))
        N_pad = _round_up(N, tile_rows)
        if N_pad != N:
            t_flat = jnp.pad(t_flat, (0, N_pad - N))
        t_col = t_flat.reshape(N_pad, 1)

        out_full = pl.pallas_call(
            _time_embedding_rowwise_kernel,
            out_shape=jax.ShapeDtypeStruct((N_pad, F), out_dtype),
            grid_spec=pltpu.PrefetchScalarGridSpec(
                num_scalar_prefetch=0,
                grid=(N_pad // tile_rows,),
                in_specs=[
                    pl.BlockSpec((tile_rows, 1), lambda i: (i, 0)),
                    pl.BlockSpec((1, F), lambda i: (0, 0)),
                    pl.BlockSpec((1, F), lambda i: (0, 0)),
                ],
                out_specs=pl.BlockSpec((tile_rows, F), lambda i: (i, 0)),
            ),
            compiler_params=compiler_params,
        )(t_col, w_full, b_full)
        out_flat = out_full[:N]

    # TODO(synk): training-mode dropout (p=0.1) not implemented; eval-mode identity.
    return out_flat.reshape(B, L, F)


def reference(t, w_lin, b_lin, w_per, b_per):
    t3 = t[..., None].astype(jnp.float32)                 # (B, L, 1)
    out_linear = t3 * w_lin.reshape(1, 1) + b_lin         # (B, L, 1)
    out_periodic = jnp.sin(t3 * w_per[:, 0] + b_per)      # (B, L, F-1)
    return jnp.concatenate([out_linear, out_periodic], axis=-1)


if __name__ == "__main__":
    key = jax.random.PRNGKey(0)
    kt, k1, k2, k3, k4 = jax.random.split(key, 5)

    B, L = 2, 8
    in_features = 1          # implied by t.unsqueeze(-1)
    t = jax.random.uniform(kt, (B, L), dtype=jnp.float32) * 10.0   # time stamps

    # --- test 1: out_features = 32  (lane-dense packed path) ---------------
    out_features = 32
    w_lin = jax.random.uniform(k1, (in_features, in_features), minval=-1.0, maxval=1.0)
    b_lin = jax.random.uniform(k2, (in_features,), minval=-1.0, maxval=1.0)
    w_per = jax.random.uniform(k3, (out_features - 1, in_features), minval=-1.0, maxval=1.0)
    b_per = jax.random.uniform(k4, (out_features - 1,), minval=-1.0, maxval=1.0)

    out = jax.block_until_ready(time_embedding(t, w_lin, b_lin, w_per, b_per))
    ref = reference(t, w_lin, b_lin, w_per, b_per)
    assert out.shape == (B, L, out_features), out.shape
    assert jnp.allclose(out, ref, atol=1e-5, rtol=1e-5), float(jnp.max(jnp.abs(out - ref)))

    # --- test 2: out_features = 48  (fallback row-wise path) ---------------
    out_features2 = 48
    k5, k6 = jax.random.split(k4)
    w_per2 = jax.random.uniform(k5, (out_features2 - 1, in_features), minval=-1.0, maxval=1.0)
    b_per2 = jax.random.uniform(k6, (out_features2 - 1,), minval=-1.0, maxval=1.0)

    out2 = jax.block_until_ready(time_embedding(t, w_lin, b_lin, w_per2, b_per2))
    ref2 = reference(t, w_lin, b_lin, w_per2, b_per2)
    assert out2.shape == (B, L, out_features2), out2.shape
    assert jnp.allclose(out2, ref2, atol=1e-5, rtol=1e-5), float(jnp.max(jnp.abs(out2 - ref2)))

    print("KERNEL_OK")
</pallas_src>

<mosaic_0001>
module attributes {stable_mosaic.version = 11 : i64} {
  func.func @_time_embedding_packed_kernel(%arg0: i32, %arg1: memref<8x4xf32, #tpu.memory_space<vmem>>, %arg2: memref<1x128xf32, #tpu.memory_space<vmem>>, %arg3: memref<1x128xf32, #tpu.memory_space<vmem>>, %arg4: memref<1x128xi32, #tpu.memory_space<vmem>>, %arg5: memref<1x128xi32, #tpu.memory_space<vmem>>, %arg6: memref<8x128xf32, #tpu.memory_space<vmem>>) attributes {dimension_semantics = [#tpu.dimension_semantics<parallel>], iteration_bounds = array<i64: 1>, scalar_prefetch = 0 : i64, scratch_operands = 0 : i64, tpu.core_type = #tpu.core_type<tc>, window_params = [{transform_indices = @transform_0, window_bounds = array<i64: 8, 4>}, {pipeline_mode = #tpu.pipeline_mode<synchronous>, transform_indices = @transform_1, window_bounds = array<i64: 1, 128>}, {pipeline_mode = #tpu.pipeline_mode<synchronous>, transform_indices = @transform_2, window_bounds = array<i64: 1, 128>}, {pipeline_mode = #tpu.pipeline_mode<synchronous>, transform_indices = @transform_3, window_bounds = array<i64: 1, 128>}, {pipeline_mode = #tpu.pipeline_mode<synchronous>, transform_indices = @transform_4, window_bounds = array<i64: 1, 128>}, {transform_indices = @transform_5, window_bounds = array<i64: 8, 128>}]} {
    %c0 = arith.constant 0 : index
    %c0_0 = arith.constant 0 : index
    %0 = vector.load %arg1[%c0, %c0_0] : memref<8x4xf32, #tpu.memory_space<vmem>>, vector<8x4xf32>
    %c0_1 = arith.constant 0 : index
    %c0_2 = arith.constant 0 : index
    %1 = vector.load %arg4[%c0_1, %c0_2] : memref<1x128xi32, #tpu.memory_space<vmem>>, vector<1x128xi32>
    %2 = vector.extract_strided_slice %0 {offsets = [0, 0], sizes = [8, 1], strides = [1, 1]} : vector<8x4xf32> to vector<8x1xf32>
    %c1_i32 = arith.constant 1 : i32
    %3 = vector.broadcast %c1_i32 : i32 to vector<1x128xi32>
    %4 = arith.cmpi eq, %1, %3 : vector<1x128xi32>
    %5 = vector.extract_strided_slice %0 {offsets = [0, 1], sizes = [8, 1], strides = [1, 1]} : vector<8x4xf32> to vector<8x1xf32>
    %6 = vector.shape_cast %4 : vector<1x128xi1> to vector<1x128xi1>
    %7 = vector.broadcast %6 : vector<1x128xi1> to vector<8x128xi1>
    %8 = vector.shape_cast %5 : vector<8x1xf32> to vector<8x1xf32>
    %9 = vector.broadcast %8 : vector<8x1xf32> to vector<8x128xf32>
    %10 = vector.shape_cast %2 : vector<8x1xf32> to vector<8x1xf32>
    %11 = vector.broadcast %10 : vector<8x1xf32> to vector<8x128xf32>
    %12 = arith.select %7, %9, %11 : vector<8x128xi1>, vector<8x128xf32>
    %c2_i32 = arith.constant 2 : i32
    %13 = vector.broadcast %c2_i32 : i32 to vector<1x128xi32>
    %14 = arith.cmpi eq, %1, %13 : vector<1x128xi32>
    %15 = vector.extract_strided_slice %0 {offsets = [0, 2], sizes = [8, 1], strides = [1, 1]} : vector<8x4xf32> to vector<8x1xf32>
    %16 = vector.shape_cast %14 : vector<1x128xi1> to vector<1x128xi1>
    %17 = vector.broadcast %16 : vector<1x128xi1> to vector<8x128xi1>
    %18 = vector.shape_cast %15 : vector<8x1xf32> to vector<8x1xf32>
    %19 = vector.broadcast %18 : vector<8x1xf32> to vector<8x128xf32>
    %20 = arith.select %17, %19, %12 : vector<8x128xi1>, vector<8x128xf32>
    %c3_i32 = arith.constant 3 : i32
    %21 = vector.broadcast %c3_i32 : i32 to vector<1x128xi32>
    %22 = arith.cmpi eq, %1, %21 : vector<1x128xi32>
    %23 = vector.extract_strided_slice %0 {offsets = [0, 3], sizes = [8, 1], strides = [1, 1]} : vector<8x4xf32> to vector<8x1xf32>
    %24 = vector.shape_cast %22 : vector<1x128xi1> to vector<1x128xi1>
    %25 = vector.broadcast %24 : vector<1x128xi1> to vector<8x128xi1>
    %26 = vector.shape_cast %23 : vector<8x1xf32> to vector<8x1xf32>
    %27 = vector.broadcast %26 : vector<8x1xf32> to vector<8x128xf32>
    %28 = arith.select %25, %27, %20 : vector<8x128xi1>, vector<8x128xf32>
    %c0_3 = arith.constant 0 : index
    %c0_4 = arith.constant 0 : index
    %29 = vector.load %arg2[%c0_3, %c0_4] : memref<1x128xf32, #tpu.memory_space<vmem>>, vector<1x128xf32>
    %30 = vector.broadcast %29 : vector<1x128xf32> to vector<8x128xf32>
    %31 = arith.mulf %28, %30 : vector<8x128xf32>
    %c0_5 = arith.constant 0 : index
    %c0_6 = arith.constant 0 : index
    %32 = vector.load %arg3[%c0_5, %c0_6] : memref<1x128xf32, #tpu.memory_space<vmem>>, vector<1x128xf32>
    %33 = vector.broadcast %32 : vector<1x128xf32> to vector<8x128xf32>
    %34 = arith.addf %31, %33 : vector<8x128xf32>
    %c0_7 = arith.constant 0 : index
    %c0_8 = arith.constant 0 : index
    %35 = vector.load %arg5[%c0_7, %c0_8] : memref<1x128xi32, #tpu.memory_space<vmem>>, vector<1x128xi32>
    %c0_i32 = arith.constant 0 : i32
    %36 = vector.broadcast %c0_i32 : i32 to vector<1x128xi32>
    %37 = arith.cmpi eq, %35, %36 : vector<1x128xi32>
    %38 = math.sin %34 : vector<8x128xf32>
    %39 = vector.shape_cast %37 : vector<1x128xi1> to vector<1x128xi1>
    %40 = vector.broadcast %39 : vector<1x128xi1> to vector<8x128xi1>
    %41 = arith.select %40, %34, %38 : vector<8x128xi1>, vector<8x128xf32>
    %c0_9 = arith.constant 0 : index
    %c0_10 = arith.constant 0 : index
    %42 = vector.load %arg6[%c0_9, %c0_10] : memref<8x128xf32, #tpu.memory_space<vmem>>, vector<8x128xf32>
    tpu.vector_store %arg6[%c0_9, %c0_10], %41 {strides = array<i32>} : memref<8x128xf32, #tpu.memory_space<vmem>>, vector<8x128xf32>,
    return
  }
  func.func @transform_0(%arg0: i32) -> (i32, i32) {
    %c0_i32 = arith.constant 0 : i32
    %c0_i32_0 = arith.constant 0 : i32
    return %arg0, %c0_i32 : i32, i32
  }
  func.func @transform_1(%arg0: i32) -> (i32, i32) {
    %c0_i32 = arith.constant 0 : i32
    %c0_i32_0 = arith.constant 0 : i32
    %c0_i32_1 = arith.constant 0 : i32
    return %c0_i32, %c0_i32_0 : i32, i32
  }
  func.func @transform_2(%arg0: i32) -> (i32, i32) {
    %c0_i32 = arith.constant 0 : i32
    %c0_i32_0 = arith.constant 0 : i32
    %c0_i32_1 = arith.constant 0 : i32
    return %c0_i32, %c0_i32_0 : i32, i32
  }
  func.func @transform_3(%arg0: i32) -> (i32, i32) {
    %c0_i32 = arith.constant 0 : i32
    %c0_i32_0 = arith.constant 0 : i32
    %c0_i32_1 = arith.constant 0 : i32
    return %c0_i32, %c0_i32_0 : i32, i32
  }
  func.func @transform_4(%arg0: i32) -> (i32, i32) {
    %c0_i32 = arith.constant 0 : i32
    %c0_i32_0 = arith.constant 0 : i32
    %c0_i32_1 = arith.constant 0 : i32
    return %c0_i32, %c0_i32_0 : i32, i32
  }
  func.func @transform_5(%arg0: i32) -> (i32, i32) {
    %c0_i32 = arith.constant 0 : i32
    %c0_i32_0 = arith.constant 0 : i32
    return %arg0, %c0_i32 : i32, i32
  }
}

</mosaic_0001>

<bundles_post_ra>
// kernel: tpu_custom_call.1
= control target key start
LH: loop header
LB: loop body
LE: loop exit
PB: predicated region body
PF: predicated region fallthrough
CT: control target
= control target key end

     0   :  { %v290_v1 = vmov 1   ;;  %v291_v2 = vmov 2   ;;  %s423_s0 = inlined_call_operand.vmem [shape: f32[8,4], index: 0, kind: input, shape index: {}]   ;;  %s424_s1 = inlined_call_operand.vmem [shape: f32[1,128], index: 1, kind: input, shape index: {}]   ;;  %s425_s2 = inlined_call_operand.vmem [shape: f32[1,128], index: 2, kind: input, shape index: {}]   ;;  %s426_s3 = inlined_call_operand.vmem [shape: s32[1,128], index: 3, kind: input, shape index: {}]   ;;  %s427_s4 = inlined_call_operand.vmem [shape: s32[1,128], index: 4, kind: input, shape index: {}]   ;;  %s428_s5 = inlined_call_operand.hbm [shape: f32[8,128], index: 5, kind: output, shape index: {}]  }
   0x1   :  { %v21_v0 = vld [vmem:[%s423_s0] sm:$0xff]  ;;  %257 = vset.pattern.permute.xlu0 %v290_v1  ;;  %259 = vset.pattern.permute.xlu1 %v291_v2 }
   0x2   :  { %10 = vsyncpa [#allocation3], 0  ;;  %29 = vperm.xlu0 %257, %v21_v0   ;;  %42 = vperm.xlu1 %259, %v21_v0   ;;  %v292_v3 = vmov 0   ;;  %v293_v4 = vmov 3   ;;  %v22_v5 = vld [vmem:[%s426_s3] sm:$0x1] }
   0x3   :  { %vm23_vm0 = vcmp.eq.s32.totalorder %v22_v5, 1  ;;  %vm37_vm1 = vcmp.eq.s32.totalorder %v22_v5, 2  ;;  %vm46_vm2 = vcmp.eq.s32.totalorder %v22_v5, 3  ;;  %v262_v15 = vld [vmem:[%s424_s1] ss:$0 sm:$0xff]  ;;  %s234_s27 = sshll.u32 %s428_s5, 4  ;;  %s235_s27 = int_to_ptr.hbm [resolvable:$true] %s234_s27 }
   0x4   :  { %v24_v8 = vsel %vm23_vm0, 1, %v292_v3  ;;  %v38_v9 = vsel %vm37_vm1, 1, %v292_v3  ;;  %v47_v10 = vsel %vm46_vm2, 1, %v292_v3  ;;  %v263_v18 = vld [vmem:[%s425_s2] ss:$0 sm:$0xff] }
   0x5   :  { %v25_v11 = vperm.slane %v24_v8, 0  ;;  %v39_v12 = vperm.slane %v38_v9, 0  ;;  %v48_v13 = vperm.slane %v47_v10, 0  ;;  %v294_v34 = vmov 683565275  }
   0x6   :  { %v295_v36 = vmov 2475754826   ;;  %v296_v39 = vmov 2131351028   ;;  %v297_v42 = vmov 2102212464  }
   0x7   :  { %vm26_vm3 = vcmp.eq.s32.totalorder %v25_v11, 1  ;;  %vm40_vm4 = vcmp.eq.s32.totalorder %v39_v12, 1  ;;  %vm49_vm5 = vcmp.eq.s32.totalorder %v48_v13, 1  ;;  %v298_v45 = vmov 920167782  }
   0x8   :  { %v299_v48 = vmov 1326507024  }
   0xa   :  { %258 = vset.pattern.permute.xlu0 %v292_v3  ;;  %260 = vset.pattern.permute.xlu1 %v293_v4 }
   0xb   :  { %33 = vperm.xlu0 %258, %v21_v0   ;;  %51 = vperm.xlu1 %260, %v21_v0  }
  0x13   :  { %261 = vset.pattern.permute.xlu0 %v293_v4 }
  0x74   :  { %v30_v6 = vpop.permute.xlu0 %29  ;;  %v43_v7 = vpop.permute.xlu1 %42 }
  0x7d   :  { %v34_v14 = vpop.permute.xlu0 %33  ;;  %v52_v16 = vpop.permute.xlu1 %51 }
  0x7e   :  { %v36_v17 = vsel %vm26_vm3, %v30_v6, %v34_v14 }
  0x7f   :  { %v45_v19 = vsel %vm40_vm4, %v43_v7, %v36_v17 }
  0x80   :  { %v54_v20 = vsel %vm49_vm5, %v52_v16, %v45_v19 }
  0x81   :  { %v59_v21 = vmul.f32 %v262_v15, %v54_v20 }
  0x83   :  { %v347_v22 = vadd.f32 %v263_v18, %v59_v21 }
  0x85   :  { %v70_v23 = vand.u32 2139095040, %v347_v22  ;;  %v67_v26 = vand.u32 2147483647, %v347_v22  ;;  %vm69_vm2 = vcmp.lt.s32.totalorder %v347_v22, 0 }
  0x87   :  { %v71_v24 = vshrl.u32 %v70_v23, 23  ;;  %v74_v29 = vand.u32 8388607, %v67_v26  ;;  %vm405_vm3 = vcmp.le.f32.partialorder %v67_v26, 0.7853982 }
  0x89   :  { %v243_v25 = vadd.s32 4294967169, %v71_v24  ;;  %v75_v33 = vor.u32 8388608, %v74_v29 }
  0x8b   :  { %v77_v27 = vadd.s32 1, %v243_v25  ;;  %v364_v55 = vshll.u32 %v75_v33, 8 }
  0x8d   :  { %vm78_vm6 = vcmp.gt.s32.totalorder %v77_v27, 0  ;;  %v116_v0 = vand.u32 65535, %v364_v55  ;;  %v117_v1 = vshrl.u32 %v364_v55, 16 }
  0x8e   :  { %v79_v28 = vsel %vm78_vm6, %v77_v27, 0 }
  0x8f   :  { %v81_v30 = vand.u32 31, %v79_v28  ;;  %v355_v32 = vshrl.u32 %v79_v28, 5 }
  0x91   :  { %v353_v31 = vsub.s32 32, %v81_v30  ;;  %v84_v35 = vshll.u32 %v294_v34, %v81_v30  ;;  %v87_v37 = vshll.u32 %v295_v36, %v81_v30  ;;  %v90_v41 = vshll.u32 %v296_v39, %v81_v30 }
  0x92   :  { %v93_v44 = vshll.u32 %v297_v42, %v81_v30  ;;  %v96_v47 = vshll.u32 %v298_v45, %v81_v30  ;;  %vm99_vm7 = vcmp.lt.s32.totalorder %v355_v32, 1  ;;  %vm102_vm8 = vcmp.lt.s32.totalorder %v355_v32, 4 }
  0x93   :  { %v85_v38 = vshrl.u32 %v295_v36, %v353_v31  ;;  %v88_v40 = vshrl.u32 %v296_v39, %v353_v31  ;;  %v91_v43 = vshrl.u32 %v297_v42, %v353_v31  ;;  %v94_v46 = vshrl.u32 %v298_v45, %v353_v31 }
  0x94   :  { %v97_v49 = vshrl.u32 %v299_v48, %v353_v31  ;;  %vm101_vm9 = vcmp.lt.s32.totalorder %v355_v32, 3  ;;  %vm100_vm10 = vcmp.lt.s32.totalorder %v355_v32, 2  ;;  %v83_v29 = vshrl.u32 %v294_v34, %v353_v31 }
  0x95   :  { %v86_v50 = vor.u32 %v85_v38, %v84_v35  ;;  %v89_v51 = vor.u32 %v88_v40, %v87_v37  ;;  %v92_v52 = vor.u32 %v91_v43, %v90_v41  ;;  %v95_v53 = vor.u32 %v94_v46, %v93_v44 }
  0x96   :  { %v98_v54 = vor.u32 %v97_v49, %v96_v47 }
  0x97   :  { %v107_v56 = vsel %vm99_vm7, %v86_v50, %v89_v51  ;;  %v111_v57 = vsel %vm99_vm7, %v89_v51, %v92_v52  ;;  %v108_v58 = vsel %vm102_vm8, %v95_v53, 920167782  ;;  %v104_v25 = vsel %vm102_vm8, %v92_v52, 2102212464 }
  0x98   :  { %v112_v59 = vsel %vm102_vm8, %v98_v54, 1326507024  ;;  %v109_v60 = vsel %vm101_vm9, %v92_v52, %v108_v58  ;;  %v103_v38 = vsel %vm99_vm7, %v83_v29, %v86_v50  ;;  %v105_v39 = vsel %vm101_vm9, %v89_v51, %v104_v25 }
  0x99   :  { %v113_v61 = vsel %vm101_vm9, %v95_v53, %v112_v59  ;;  %v110_v62 = vsel %vm100_vm10, %v107_v56, %v109_v60  ;;  %v106_v31 = vsel %vm100_vm10, %v103_v38, %v105_v39  ;;  %vm210_vm9 = vweird.f32 %v347_v22 }
  0x9a   :  { %v114_v63 = vsel %vm100_vm10, %v111_v57, %v113_v61  ;;  %v140_v5 = vand.u32 65535, %v110_v62  ;;  %v141_v6 = vshrl.u32 %v110_v62, 16  ;;  %v160_v47 = vmul.u32 %v364_v55, %v106_v31 }
  0x9b   :  { %v118_v2 = vand.u32 65535, %v114_v63  ;;  %v119_v4 = vshrl.u32 %v114_v63, 16 }
  0x9c   :  { %v143_v9 = vmul.u32 %v141_v6, %v116_v0  ;;  %v144_v10 = vmul.u32 %v140_v5, %v117_v1  ;;  %v142_v14 = vmul.u32 %v140_v5, %v116_v0  ;;  %v145_v18 = vmul.u32 %v141_v6, %v117_v1 }
  0x9d   :  { %v121_v7 = vmul.u32 %v119_v4, %v116_v0  ;;  %v122_v8 = vmul.u32 %v118_v2, %v117_v1  ;;  %v120_v11 = vmul.u32 %v118_v2, %v116_v0  ;;  %v123_v13 = vmul.u32 %v119_v4, %v117_v1 }
  0x9e   :  { %v146_v15 = vshll.u32 %v143_v9, 16  ;;  %v148_v20 = vshll.u32 %v144_v10, 16  ;;  %v147_v36 = vshrl.u32 %v143_v9, 16  ;;  %v149_v42 = vshrl.u32 %v144_v10, 16 }
  0x9f   :  { %v124_v12 = vshll.u32 %v121_v7, 16  ;;  %v126_v16 = vshll.u32 %v122_v8, 16  ;;  %v125_v30 = vshrl.u32 %v121_v7, 16  ;;  %v127_v40 = vshrl.u32 %v122_v8, 16 }
  0xa0   :  { %vm150_vm12 = vc.u32 %v142_v14, %v146_v15  ;;  %v152_v21 = vadd.s32 %v146_v15, %v142_v14 }
  0xa1   :  { %vm128_vm11 = vc.u32 %v120_v11, %v124_v12  ;;  %v130_v17 = vadd.s32 %v124_v12, %v120_v11  ;;  %v151_v24 = vsel %vm150_vm12, 1, %v292_v3 }
  0xa2   :  { %v129_v19 = vsel %vm128_vm11, 1, %v292_v3  ;;  %v153_v28 = vadd.s32 %v151_v24, %v145_v18  ;;  %vm154_vm14 = vc.u32 %v152_v21, %v148_v20  ;;  %v156_v45 = vadd.s32 %v152_v21, %v148_v20  ;;  %v65_v18 = vld [vmem:[%s427_s4] sm:$0x1]  ;;  %s300_s4 = smov [#allocation2]  }
  0xa3   :  { %v131_v23 = vadd.s32 %v129_v19, %v123_v13  ;;  %vm132_vm13 = vc.u32 %v130_v17, %v126_v16  ;;  %v155_v35 = vsel %vm154_vm14, 1, %v292_v3  ;;  %vm66_vm4 = vcmp.eq.s32.totalorder %v65_v18, 0  ;;  %s232_s24 = sshll.u32 %s300_s4, 4  ;;  %s233_s24 = int_to_ptr.vmem [resolvable:$true] %s232_s24 }
  0xa4   :  { %v133_v27 = vsel %vm132_vm13, 1, %v292_v3  ;;  %v157_v37 = vadd.s32 %v155_v35, %v153_v28  ;;  %v222_v28 = vsel %vm66_vm4, 1, %v292_v3 }
  0xa5   :  { %v135_v33 = vadd.s32 %v133_v27, %v131_v23 }
  0xa6   :  { %v158_v43 = vadd.s32 %v157_v37, %v147_v36  ;;  %v223_v37 = vperm.slane %v222_v28, 0 }
  0xa7   :  { %v136_v41 = vadd.s32 %v135_v33, %v125_v30 }
  0xa8   :  { %v159_v34 = vadd.s32 %v158_v43, %v149_v42  ;;  %vm224_vm8 = vcmp.eq.s32.totalorder %v223_v37, 1 }
  0xa9   :  { %v137_v44 = vadd.s32 %v136_v41, %v127_v40 }
  0xaa   :  { %v163_v46 = vadd.s32 1, %v159_v34 }
  0xab   :  { %vm162_vm15 = vc.u32 %v137_v44, %v156_v45  ;;  %v161_v32 = vadd.s32 %v156_v45, %v137_v44 }
  0xac   :  { %v164_v48 = vsel %vm162_vm15, %v163_v46, %v159_v34 }
  0xad   :  { %v165_v49 = vadd.s32 %v164_v48, %v160_v47 }
  0xaf   :  { %v166_v50 = vadd.s32 536870912, %v165_v49 }
  0xb1   :  { %v167_v52 = vshrl.u32 %v166_v50, 30 }
  0xb3   :  { %v168_v53 = vshll.u32 %v167_v52, 30  ;;  %v191_v10 = vsub.s32 4, %v167_v52 }
  0xb5   :  { %v169_v51 = vsub.s32 %v165_v49, %v168_v53  ;;  %v192_v15 = vsel %vm69_vm2, %v191_v10, %v167_v52 }
  0xb6   :  { %v194_v26 = vsel %vm405_vm3, 0, %v192_v15 }
  0xb7   :  { %vm170_vm0 = vcmp.lt.s32.totalorder %v169_v51, 0  ;;  %v171_v54 = vsub.s32 0, %v169_v51  ;;  %v211_v24 = vadd.s32 3, %v194_v26 }
  0xb9   :  { %v172_v56 = vsel %vm170_vm0, %v171_v54, %v169_v51  ;;  %v212_v33 = vand.u32 3, %v211_v24 }
  0xba   :  { %v173_v57 = vclz %v172_v56 }
  0xbb   :  { %vm214_vm5 = vcmp.eq.s32.totalorder %v212_v33, 0  ;;  %vm217_vm6 = vcmp.eq.s32.totalorder %v212_v33, 2  ;;  %vm213_vm7 = vcmp.lt.s32.totalorder %v212_v33, 2 }
  0xbc   :  { %v244_v58 = vadd.s32 4294967294, %v173_v57 }
  0xbe   :  { %vm245_vm1 = vcmp.lt.s32.totalorder %v244_v58, 0 }
  0xbf   :  { %v176_v59 = vsel %vm245_vm1, 0, %v244_v58 }
  0xc0   :  { %v177_v60 = vsub.s32 32, %v176_v59  ;;  %v181_v61 = vsub.s32 4294967266, %v176_v59  ;;  %v178_v62 = vshll.u32 %v169_v51, %v176_v59 }
  0xc2   :  { %v179_v63 = vshrl.u32 %v161_v32, %v177_v60  ;;  %v182_v0 = vadd.s32 127, %v181_v61 }
  0xc4   :  { %v180_v55 = vor.u32 %v179_v63, %v178_v62  ;;  %v183_v1 = vshll.u32 %v182_v0, 23 }
  0xc6   :  { %v184_v2 = vor.u32 4788187, %v183_v1  ;;  %v187_v5 = vcvt.s32.f32 %v180_v55 }
  0xc8   :  { %v185_v4 = vand.u32 2147483647, %v184_v2 }
  0xca   :  { %v188_v6 = vmul.f32 %v187_v5, %v185_v4 }
  0xcc   :  { %v189_v7 = vxor.u32 2147483648, %v188_v6 }
  0xce   :  { %v190_v9 = vsel %vm69_vm2, %v189_v7, %v188_v6 }
  0xcf   :  { %v193_v11 = vsel %vm405_vm3, %v347_v22, %v190_v9 }
  0xd0   :  { %v195_v12 = vmul.f32 %v193_v11, %v193_v11 }
  0xd2   :  { %v196_v13 = vmul.f32 -0.001358992, %v195_v12  ;;  %v203_v14 = vmul.f32 -0.00019511016, %v195_v12 }
  0xd4   :  { %v197_v16 = vadd.f32 0.041655596, %v196_v13  ;;  %v204_v17 = vadd.f32 0.008332121, %v203_v14 }
  0xd6   :  { %v198_v19 = vmul.f32 %v197_v16, %v195_v12  ;;  %v205_v20 = vmul.f32 %v204_v17, %v195_v12 }
  0xd8   :  { %v199_v21 = vadd.f32 -0.4999988, %v198_v19  ;;  %v206_v23 = vadd.f32 -0.16666654, %v205_v20 }
  0xda   :  { %v200_v25 = vmul.f32 %v199_v21, %v195_v12  ;;  %v207_v27 = vmul.f32 %v206_v23, %v195_v12 }
  0xdc   :  { %v201_v29 = vadd.f32 1.0, %v200_v25  ;;  %v208_v30 = vadd.f32 1.0, %v207_v27 }
  0xde   :  { %v209_v35 = vmul.f32 %v208_v30, %v193_v11  ;;  %v218_v36 = vxor.u32 2147483648, %v201_v29 }
  0xe0   :  { %v215_v38 = vxor.u32 2147483648, %v209_v35  ;;  %v219_v40 = vsel %vm217_vm6, %v218_v36, %v209_v35 }
  0xe2   :  { %v216_v39 = vsel %vm214_vm5, %v201_v29, %v215_v38 }
  0xe3   :  { %v220_v3 = vsel %vm213_vm7, %v216_v39, %v219_v40 }
  0xe4   :  { %v221_v41 = vsel %vm210_vm9, nan, %v220_v3 }
  0xe5   :  { %v225_v42 = vsel %vm224_vm8, %v347_v22, %v221_v41 }
  0xe6   :  { %226 = vst [vmem:[#allocation2] sm:$0xff] %v225_v42 }
  0xe7   :  { %237 = dma.vmem_to_hbm [thread:$0]  %s233_s24, 128, %s235_s27, [#allocation3]  }
  0xe8   :  { %288 = dma.done.wait [#allocation3], 128  }
  0xe9   :  { %289 = vsyncadd [#allocation3], 4294967168 }
  0xea   :  { %242 = vsyncpa [#allocation3], 1 }

</bundles_post_ra>
